<compile_context>
chip_gen: v7x
topology: tpu7x:2x2x1
jax: 0.10.0
libtpu: 0.0.40
codegen_flags: <defaults>
</compile_context>

<pallas_src>
import functools

import jax
import jax.numpy as jnp
from jax.experimental import pallas as pl
from jax.experimental.pallas import tpu as pltpu


def _round_up(x, m):
    return ((x + m - 1) // m) * m


def _auto_block_b(B, compute_dtype):
    """Dtype-aware batch tile. Keeps >= 2 grid steps for B > 64 (v7x megacore)."""
    two_byte = jnp.dtype(compute_dtype).itemsize == 2
    align = 16 if two_byte else 8        # bf16 packs two rows per sublane
    cap = 4096 if two_byte else 2048     # ~8 MiB of double-buffered x either way
    if B < 8:
        return B                          # full-dim block (allowed: equals array dim)
    if B <= 64:
        return (B // 8) * 8               # single/few small tiles; partial tail masked
    # Keep at least 2 grid steps so both v7x TensorCores get work.
    return min(cap, _round_up(pl.cdiv(B, 2), align))


def _mlp_head_kernel(x_ref, w1_ref, b1_ref, w2_ref, b2_ref, o_ref):
    # Linear 1 on the MXU with f32 accumulation; bias + ReLU epilogue in f32.
    h = jnp.dot(x_ref[...], w1_ref[...], preferred_element_type=jnp.float32)
    h = jnp.maximum(h + b1_ref[...], 0.0)
    # Dropout(p) is identity at inference time (nn.Dropout eval mode).
    # TODO(synk): training-mode dropout (pltpu.prng_seed / prng_random_bits) not implemented.
    # Linear 2: lane-dense 128-wide MXU matmul, then slice to num_classes for the store
    # (small masked vst is hidden behind the dominant x DMA stream).
    h = h.astype(w2_ref.dtype)
    logits = jnp.dot(h, w2_ref[...], preferred_element_type=jnp.float32)
    logits = logits + b2_ref[...]
    probs = jax.nn.sigmoid(logits)
    o_ref[...] = probs[:, : o_ref.shape[-1]].astype(o_ref.dtype)


def prepare_params(w1, b1, w2, b2, compute_dtype=jnp.bfloat16):
    """One-time pad/cast of the weights (hoisted out of the per-call path).

    Returns (w1c, b1f, w2c_padded, b2f_padded). W2/b2 are padded to 128 lanes so the
    second matmul is lane-dense on the MXU; the kernel stores only num_classes cols.
    """
    _, H = w1.shape
    C = w2.shape[1]
    c_pad = _round_up(max(C, 128), 128)
    b1 = jnp.asarray(b1).reshape(1, H)
    b2 = jnp.asarray(b2).reshape(1, C)
    w2p = jnp.pad(jnp.asarray(w2), ((0, 0), (0, c_pad - C)))
    b2p = jnp.pad(b2, ((0, 0), (0, c_pad - C)))
    return (jnp.asarray(w1).astype(compute_dtype), b1.astype(jnp.float32),
            w2p.astype(compute_dtype), b2p.astype(jnp.float32))


@functools.partial(jax.jit, static_argnames=("num_classes", "block_b"))
def radar_classifier_forward(x, w1c, b1f, w2c, b2f, *, num_classes=10, block_b=None):
    """x: (B, in_features) -> (B, num_classes) f32 probabilities in [0, 1].

    For best HBM bandwidth pass x already in the params' compute dtype (bf16 by
    default); otherwise it is cast here (one extra HBM pass over x).
    """
    B, F = x.shape
    H = w1c.shape[1]
    c_pad = w2c.shape[1]
    compute_dtype = w1c.dtype

    if x.dtype != compute_dtype:
        x = x.astype(compute_dtype)

    if block_b is None:
        block_b = _auto_block_b(B, compute_dtype)
    grid = (pl.cdiv(B, block_b),)   # no jnp.pad of x: partial last block is masked

    # Only raise the scoped VMEM limit when the tile actually needs it; cap well
    # below v7x's 64 MiB physical VMEM.
    itemsize = jnp.dtype(compute_dtype).itemsize
    vmem_need = (2 * block_b * F * itemsize              # x double buffer
                 + 2 * block_b * num_classes * 4         # output double buffer (f32)
                 + 2 * (F * H + H * c_pad) * itemsize    # weights (conservative x2)
                 + 2 * (H + c_pad) * 4)                  # biases
    vmem_limit = None
    if vmem_need > 10 * 1024 * 1024:
        vmem_limit = min(int(vmem_need * 1.3) + (2 << 20), 40 * 1024 * 1024)

    out = pl.pallas_call(
        _mlp_head_kernel,
        out_shape=jax.ShapeDtypeStruct((B, num_classes), jnp.float32),
        grid_spec=pltpu.PrefetchScalarGridSpec(
            num_scalar_prefetch=0,
            grid=grid,
            in_specs=[
                pl.BlockSpec((block_b, F), lambda i: (i, 0)),   # x tile (streamed)
                pl.BlockSpec((F, H), lambda i: (0, 0)),         # W1 (resident)
                pl.BlockSpec((1, H), lambda i: (0, 0)),         # b1
                pl.BlockSpec((H, c_pad), lambda i: (0, 0)),     # W2 (128-lane padded)
                pl.BlockSpec((1, c_pad), lambda i: (0, 0)),     # b2 (padded)
            ],
            out_specs=pl.BlockSpec((block_b, num_classes), lambda i: (i, 0)),
        ),
        compiler_params=pltpu.CompilerParams(
            dimension_semantics=("parallel",),
            vmem_limit_bytes=vmem_limit,
        ),
    )(x, w1c, b1f, w2c, b2f)
    return out


def init_params(key, in_features=512, hidden_features=128, num_classes=10):
    """Deterministic init mimicking nn.Linear's default U(-1/sqrt(fan_in), +)."""
    k1, k2, k3, k4 = jax.random.split(key, 4)
    lim1 = 1.0 / (in_features ** 0.5)
    lim2 = 1.0 / (hidden_features ** 0.5)
    w1 = jax.random.uniform(k1, (in_features, hidden_features), jnp.float32, -lim1, lim1)
    b1 = jax.random.uniform(k2, (hidden_features,), jnp.float32, -lim1, lim1)
    w2 = jax.random.uniform(k3, (hidden_features, num_classes), jnp.float32, -lim2, lim2)
    b2 = jax.random.uniform(k4, (num_classes,), jnp.float32, -lim2, lim2)
    return w1, b1, w2, b2


if __name__ == "__main__":
    key = jax.random.PRNGKey(0)
    k_x, k_p = jax.random.split(key)

    B, F, H, C = 8, 512, 128, 10
    x = jax.random.normal(k_x, (B, F), dtype=jnp.float32)
    w1, b1, w2, b2 = init_params(k_p, F, H, C)
    ref = jax.nn.sigmoid(jnp.maximum(x @ w1 + b1[None, :], 0.0) @ w2 + b2[None, :])

    # Default bf16 streaming path (f32 MXU accumulation + f32 epilogue).
    params_bf16 = prepare_params(w1, b1, w2, b2)              # bf16 by default
    x_bf16 = x.astype(jnp.bfloat16)                           # cast once, outside the call
    out = jax.block_until_ready(
        radar_classifier_forward(x_bf16, *params_bf16, num_classes=C))
    assert out.shape == (B, C)
    assert bool(jnp.all((out >= 0.0) & (out <= 1.0)))
    assert bool(jnp.allclose(out, ref, atol=3e-2, rtol=3e-2))

    # f32 path (numeric parity with the jnp reference).
    # TODO(synk): for bit-level parity with PyTorch f32, pass precision=HIGHEST to the dots.
    params_f32 = prepare_params(w1, b1, w2, b2, compute_dtype=jnp.float32)
    out_f32 = jax.block_until_ready(
        radar_classifier_forward(x, *params_f32, num_classes=C))
    assert bool(jnp.allclose(out_f32, ref, atol=1e-4, rtol=1e-4))

    # Ragged batch (B not a multiple of the tile): no wrapper-side pad copy of x,
    # partial last block is masked on writeback.
    B2 = 11
    x2 = jax.random.normal(k_x, (B2, F), dtype=jnp.float32)
    ref2 = jax.nn.sigmoid(jnp.maximum(x2 @ w1 + b1[None, :], 0.0) @ w2 + b2[None, :])
    out2 = jax.block_until_ready(
        radar_classifier_forward(x2.astype(jnp.bfloat16), *params_bf16, num_classes=C))
    assert out2.shape == (B2, C)
    assert bool(jnp.allclose(out2, ref2, atol=3e-2, rtol=3e-2))

    print("KERNEL_OK")
</pallas_src>

<mosaic_0001>
module attributes {stable_mosaic.version = 11 : i64} {
  func.func @_mlp_head_kernel(%arg0: i32, %arg1: memref<8x512xbf16, #tpu.memory_space<vmem>>, %arg2: memref<512x128xbf16, #tpu.memory_space<vmem>>, %arg3: memref<1x128xf32, #tpu.memory_space<vmem>>, %arg4: memref<128x128xbf16, #tpu.memory_space<vmem>>, %arg5: memref<1x128xf32, #tpu.memory_space<vmem>>, %arg6: memref<8x10xf32, #tpu.memory_space<vmem>>) attributes {dimension_semantics = [#tpu.dimension_semantics<parallel>], iteration_bounds = array<i64: 1>, scalar_prefetch = 0 : i64, scratch_operands = 0 : i64, tpu.core_type = #tpu.core_type<tc>, window_params = [{transform_indices = @transform_0, window_bounds = array<i64: 8, 512>}, {pipeline_mode = #tpu.pipeline_mode<synchronous>, transform_indices = @transform_1, window_bounds = array<i64: 512, 128>}, {pipeline_mode = #tpu.pipeline_mode<synchronous>, transform_indices = @transform_2, window_bounds = array<i64: 1, 128>}, {pipeline_mode = #tpu.pipeline_mode<synchronous>, transform_indices = @transform_3, window_bounds = array<i64: 128, 128>}, {pipeline_mode = #tpu.pipeline_mode<synchronous>, transform_indices = @transform_4, window_bounds = array<i64: 1, 128>}, {transform_indices = @transform_5, window_bounds = array<i64: 8, 10>}]} {
    %c0 = arith.constant 0 : index
    %c0_0 = arith.constant 0 : index
    %0 = vector.load %arg1[%c0, %c0_0] : memref<8x512xbf16, #tpu.memory_space<vmem>>, vector<8x512xbf16>
    %c0_1 = arith.constant 0 : index
    %c0_2 = arith.constant 0 : index
    %1 = vector.load %arg2[%c0_1, %c0_2] : memref<512x128xbf16, #tpu.memory_space<vmem>>, vector<512x128xbf16>
    %cst = arith.constant dense<0.000000e+00> : vector<8x128xf32>
    %2 = tpu.matmul %0, %1, %cst {dimension_numbers = #tpu.dot_dimension_numbers<[1], [0], [0], [1], [0, 0, 1, 1], [], []>} : vector<8x512xbf16>, vector<512x128xbf16>, vector<8x128xf32> -> vector<8x128xf32>
    %c0_3 = arith.constant 0 : index
    %c0_4 = arith.constant 0 : index
    %3 = vector.load %arg3[%c0_3, %c0_4] : memref<1x128xf32, #tpu.memory_space<vmem>>, vector<1x128xf32>
    %4 = vector.broadcast %3 : vector<1x128xf32> to vector<8x128xf32>
    %5 = arith.addf %2, %4 : vector<8x128xf32>
    %cst_5 = arith.constant 0.000000e+00 : f32
    %6 = vector.broadcast %cst_5 : f32 to vector<8x128xf32>
    %7 = arith.maximumf %5, %6 : vector<8x128xf32>
    %8 = arith.truncf %7 : vector<8x128xf32> to vector<8x128xbf16>
    %c0_6 = arith.constant 0 : index
    %c0_7 = arith.constant 0 : index
    %9 = vector.load %arg4[%c0_6, %c0_7] : memref<128x128xbf16, #tpu.memory_space<vmem>>, vector<128x128xbf16>
    %cst_8 = arith.constant dense<0.000000e+00> : vector<8x128xf32>
    %10 = tpu.matmul %8, %9, %cst_8 {dimension_numbers = #tpu.dot_dimension_numbers<[1], [0], [0], [1], [0, 0, 1, 1], [], []>} : vector<8x128xbf16>, vector<128x128xbf16>, vector<8x128xf32> -> vector<8x128xf32>
    %c0_9 = arith.constant 0 : index
    %c0_10 = arith.constant 0 : index
    %11 = vector.load %arg5[%c0_9, %c0_10] : memref<1x128xf32, #tpu.memory_space<vmem>>, vector<1x128xf32>
    %12 = vector.broadcast %11 : vector<1x128xf32> to vector<8x128xf32>
    %13 = arith.addf %10, %12 : vector<8x128xf32>
    %14 = arith.negf %13 : vector<8x128xf32>
    %15 = math.exp %14 : vector<8x128xf32>
    %cst_11 = arith.constant 1.000000e+00 : f32
    %16 = vector.broadcast %cst_11 : f32 to vector<8x128xf32>
    %17 = arith.addf %16, %15 : vector<8x128xf32>
    %18 = arith.divf %16, %17 : vector<8x128xf32>
    %19 = vector.extract_strided_slice %18 {offsets = [0, 0], sizes = [8, 10], strides = [1, 1]} : vector<8x128xf32> to vector<8x10xf32>
    %c0_12 = arith.constant 0 : index
    %c0_13 = arith.constant 0 : index
    %20 = vector.load %arg6[%c0_12, %c0_13] : memref<8x10xf32, #tpu.memory_space<vmem>>, vector<8x10xf32>
    tpu.vector_store %arg6[%c0_12, %c0_13], %19 {strides = array<i32>} : memref<8x10xf32, #tpu.memory_space<vmem>>, vector<8x10xf32>,
    return
  }
  func.func @transform_0(%arg0: i32) -> (i32, i32) {
    %c0_i32 = arith.constant 0 : i32
    %c0_i32_0 = arith.constant 0 : i32
    return %arg0, %c0_i32 : i32, i32
  }
  func.func @transform_1(%arg0: i32) -> (i32, i32) {
    %c0_i32 = arith.constant 0 : i32
    %c0_i32_0 = arith.constant 0 : i32
    %c0_i32_1 = arith.constant 0 : i32
    return %c0_i32, %c0_i32_0 : i32, i32
  }
  func.func @transform_2(%arg0: i32) -> (i32, i32) {
    %c0_i32 = arith.constant 0 : i32
    %c0_i32_0 = arith.constant 0 : i32
    %c0_i32_1 = arith.constant 0 : i32
    return %c0_i32, %c0_i32_0 : i32, i32
  }
  func.func @transform_3(%arg0: i32) -> (i32, i32) {
    %c0_i32 = arith.constant 0 : i32
    %c0_i32_0 = arith.constant 0 : i32
    %c0_i32_1 = arith.constant 0 : i32
    return %c0_i32, %c0_i32_0 : i32, i32
  }
  func.func @transform_4(%arg0: i32) -> (i32, i32) {
    %c0_i32 = arith.constant 0 : i32
    %c0_i32_0 = arith.constant 0 : i32
    %c0_i32_1 = arith.constant 0 : i32
    return %c0_i32, %c0_i32_0 : i32, i32
  }
  func.func @transform_5(%arg0: i32) -> (i32, i32) {
    %c0_i32 = arith.constant 0 : i32
    %c0_i32_0 = arith.constant 0 : i32
    return %arg0, %c0_i32 : i32, i32
  }
}

</mosaic_0001>

<bundles_post_ra>
// kernel: radar_classifier_forward.1
= control target key start
LH: loop header
LB: loop body
LE: loop exit
PB: predicated region body
PF: predicated region fallthrough
CT: control target
= control target key end

     0   :  { %10 = vsyncpa [#allocation3], 0  ;;  %s925_s0 = inlined_call_operand.hbm [shape: bf16[8,512], index: 0, kind: input, shape index: {}]   ;;  %s926_s1 = inlined_call_operand.hbm [shape: bf16[512,128], index: 1, kind: input, shape index: {}]   ;;  %s927_s2 = inlined_call_operand.vmem [shape: f32[1,128], index: 2, kind: input, shape index: {}]   ;;  %s928_s3 = inlined_call_operand.hbm [shape: bf16[128,128], index: 3, kind: input, shape index: {}]   ;;  %s929_s4 = inlined_call_operand.vmem [shape: f32[1,128], index: 4, kind: input, shape index: {}]   ;;  %s930_s5 = inlined_call_operand.hbm [shape: f32[8,10], index: 5, kind: output, shape index: {}]  }
   0x1   :  { %11 = vsyncpa [#allocation6], 0 }
   0x2   :  { %12 = vsyncpa [#allocation4], 0  ;;  %s827_s18 = smov [#allocation5]   ;;  %s733_s22 = scalar_lea.hbm %s926_s1, 4096 }
   0x3   :  { %s28_s19 = sshll.u32 %s827_s18, 4  ;;  %p734_p0 = scmp.ne.s32.totalorder %s926_s1, %s733_s22  ;;  %s29_s19 = int_to_ptr.vmem [resolvable:$true] %s28_s19 }
   0x4   :  { %p737_p1 = scmp.lt.u32.totalorder %s733_s22, %s926_s1 }
   0x6   :  { %p739_p2 = pnand %p737_p1, %p734_p0 }
   0x8   :  { %742 = shalt.err (!%p739_p2)
}
   0x9   :  { %s743_s27 = scalar_lea.vmem %s29_s19, 4096  ;;  %p748_p4 = scmp.lt.s32.totalorder %s29_s19, %s29_s19 }
   0xa   :  { %p744_p3 = scmp.ne.s32.totalorder %s29_s19, %s743_s27  ;;  %p749_p5 = scmp.lt.s32.totalorder %s743_s27, %s743_s27 }
   0xc   :  { %p750_p6 = por %p749_p5, %p748_p4 }
   0xe   :  { %p751_p7 = pnand %p750_p6, %p744_p3 }
  0x10   :  { %754 = shalt.err (!%p751_p7)
}
  0x11   :  { %s828_s28 = smov 64   ;;  %s829_s29 = smov 4  }
  0x12   :  { %34 = dma.hbm_to_vmem [thread:$0]  %s926_s1, 4096, %s29_s19, [#allocation6], %s828_s28, %s828_s28, %s829_s29  }
  0x13   :  { %s830_s7 = smov [#allocation2]   ;;  %s831_s9 = smov [#allocation7]  }
  0x14   :  { %s19_s8 = sshll.u32 %s830_s7, 4  ;;  %s42_s10 = sshll.u32 %s831_s9, 4  ;;  %s20_s8 = int_to_ptr.vmem [resolvable:$true] %s19_s8  ;;  %s43_s10 = int_to_ptr.vmem [resolvable:$true] %s42_s10 }
  0x15   :  { %s755_s13 = scalar_lea.hbm %s925_s0, 256 }
  0x16   :  { %p756_p8 = scmp.ne.s32.totalorder %s925_s0, %s755_s13  ;;  %p759_p9 = scmp.lt.u32.totalorder %s755_s13, %s925_s0 }
  0x18   :  { %p761_p10 = pnand %p759_p9, %p756_p8 }
  0x1a   :  { %764 = shalt.err (!%p761_p10)
}
  0x1b   :  { %s765_s1 = scalar_lea.vmem %s20_s8, 256  ;;  %p770_p12 = scmp.lt.s32.totalorder %s20_s8, %s20_s8 }
  0x1c   :  { %p766_p11 = scmp.ne.s32.totalorder %s20_s8, %s765_s1  ;;  %p771_p13 = scmp.lt.s32.totalorder %s765_s1, %s765_s1 }
  0x1e   :  { %p772_p0 = por %p771_p13, %p770_p12 }
  0x20   :  { %p773_p1 = pnand %p772_p0, %p766_p11 }
  0x22   :  { %776 = shalt.err (!%p773_p1)
}
  0x23   :  { %22 = dma.hbm_to_vmem [thread:$0]  %s925_s0, 256, %s20_s8, [#allocation3]  }
  0x24   :  { %s777_s22 = scalar_lea.hbm %s928_s3, 1024 }
  0x25   :  { %p778_p2 = scmp.ne.s32.totalorder %s928_s3, %s777_s22  ;;  %p781_p3 = scmp.lt.u32.totalorder %s777_s22, %s928_s3 }
  0x27   :  { %p783_p4 = pnand %p781_p3, %p778_p2 }
  0x29   :  { %786 = shalt.err (!%p783_p4)
}
  0x2a   :  { %s787_s27 = scalar_lea.vmem %s43_s10, 1024  ;;  %p792_p6 = scmp.lt.s32.totalorder %s43_s10, %s43_s10 }
  0x2b   :  { %p788_p5 = scmp.ne.s32.totalorder %s43_s10, %s787_s27  ;;  %p793_p7 = scmp.lt.s32.totalorder %s787_s27, %s787_s27 }
  0x2d   :  { %p794_p8 = por %p793_p7, %p792_p6 }
  0x2f   :  { %p795_p9 = pnand %p794_p8, %p788_p5 }
  0x31   :  { %798 = shalt.err (!%p795_p9)
}
  0x32   :  { %48 = dma.hbm_to_vmem [thread:$0]  %s928_s3, 1024, %s43_s10, [#allocation6], %s828_s28, %s828_s28, %s829_s29  }
  0x33   :  { %821 = dma.done.wait [#allocation3], 256  }
  0x34   :  { %822 = vsyncadd [#allocation3], 4294967040 }
  0x35   :  { %823 = dma.done.wait [#allocation6], 5120  }
  0x36   :  { %824 = vsyncadd [#allocation6], 4294962176  ;;  %v685_v0 = vld [vmem:[#allocation5 + $0x40] sm:$0xff]   ;;  %v689_v4 = vld [vmem:[#allocation5 + $0x48] sm:$0xff]   ;;  %v832_v39 = vmov 0.0   ;;  %vm833_vm0 = vmmov 0  }
  0x37   :  { %v686_v1 = vld [vmem:[#allocation5 + $0xc0] sm:$0xff]   ;;  %604 = vmatprep.subr.bf16.mxu0 %v685_v0  ;;  %v690_v5 = vld [vmem:[#allocation5 + $0xc8] sm:$0xff]   ;;  %v693_v8 = vld [vmem:[#allocation5 + $0x50] sm:$0xff]   ;;  %vm539_vm1 = vcmask 80896  }
  0x38   :  { %v687_v2 = vld [vmem:[#allocation5] sm:$0xff]   ;;  %626 = vmatprep.subr.bf16.mxu1 %v686_v1  ;;  %v691_v6 = vld [vmem:[#allocation5 + $0x8] sm:$0xff]   ;;  %v694_v9 = vld [vmem:[#allocation5 + $0xd0] sm:$0xff]  }
  0x39   :  { %v688_v3 = vld [vmem:[#allocation5 + $0x80] sm:$0xff]   ;;  %605 = vmatpush3.bf16.msra.mxu0 %v687_v2  ;;  %v692_v7 = vld [vmem:[#allocation5 + $0x88] sm:$0xff]   ;;  %v695_v10 = vld [vmem:[#allocation5 + $0x10] sm:$0xff]  }
  0x3a   :  { %627 = vmatpush3.bf16.msra.mxu1 %v688_v3  ;;  %606 = vmatprep.subr.bf16.mxu0 %v689_v4  ;;  %v696_v11 = vld [vmem:[#allocation5 + $0x90] sm:$0xff]   ;;  %v697_v12 = vld [vmem:[#allocation5 + $0x58] sm:$0xff]   ;;  %v701_v16 = vld [vmem:[#allocation5 + $0x60] sm:$0xff]  }
  0x3b   :  { %628 = vmatprep.subr.bf16.mxu1 %v690_v5  ;;  %v698_v13 = vld [vmem:[#allocation5 + $0xd8] sm:$0xff]   ;;  %v702_v17 = vld [vmem:[#allocation5 + $0xe0] sm:$0xff]   ;;  %v705_v20 = vld [vmem:[#allocation5 + $0x68] sm:$0xff]  }
  0x3c   :  { %v699_v14 = vld [vmem:[#allocation5 + $0x18] sm:$0xff]   ;;  %v703_v18 = vld [vmem:[#allocation5 + $0x20] sm:$0xff]   ;;  %v706_v21 = vld [vmem:[#allocation5 + $0xe8] sm:$0xff]  }
  0x3d   :  { %607 = vmatpush3.bf16.msra.mxu0 %v691_v6  ;;  %v700_v15 = vld [vmem:[#allocation5 + $0x98] sm:$0xff]   ;;  %v704_v19 = vld [vmem:[#allocation5 + $0xa0] sm:$0xff]   ;;  %v707_v22 = vld [vmem:[#allocation5 + $0x28] sm:$0xff]  }
  0x3e   :  { %629 = vmatpush3.bf16.msra.mxu1 %v692_v7  ;;  %608 = vmatprep.subr.bf16.mxu0 %v693_v8  ;;  %v708_v23 = vld [vmem:[#allocation5 + $0xa8] sm:$0xff]   ;;  %v709_v24 = vld [vmem:[#allocation5 + $0x70] sm:$0xff]   ;;  %v713_v28 = vld [vmem:[#allocation5 + $0x78] sm:$0xff]  }
  0x3f   :  { %630 = vmatprep.subr.bf16.mxu1 %v694_v9  ;;  %v710_v25 = vld [vmem:[#allocation5 + $0xf0] sm:$0xff]   ;;  %v714_v29 = vld [vmem:[#allocation5 + $0xf8] sm:$0xff]   ;;  %v721_v38 = vld [vmem:[#allocation7] sm:$0xff]  }
  0x40   :  { %v711_v26 = vld [vmem:[#allocation5 + $0x30] sm:$0xff]   ;;  %v715_v30 = vld [vmem:[#allocation5 + $0x38] sm:$0xff]   ;;  %v722_v40 = vld [vmem:[#allocation7 + $0x8] sm:$0xff]  }
  0x41   :  { %609 = vmatpush3.bf16.msra.mxu0 %v695_v10  ;;  %v712_v27 = vld [vmem:[#allocation5 + $0xb0] sm:$0xff]   ;;  %v716_v31 = vld [vmem:[#allocation5 + $0xb8] sm:$0xff]   ;;  %v725_v43 = vld [vmem:[#allocation7 + $0x20] sm:$0xff]  }
  0x42   :  { %631 = vmatpush3.bf16.msra.mxu1 %v696_v11  ;;  %610 = vmatprep.subr.bf16.mxu0 %v697_v12  ;;  %v61_v32 = vld [vmem:[#allocation2] sm:$0xff]  ;;  %v62_v33 = vld [vmem:[#allocation2 + $0x8] sm:$0xff]  ;;  %v726_v44 = vld [vmem:[#allocation7 + $0x28] sm:$0xff]  }
  0x43   :  { %632 = vmatprep.subr.bf16.mxu1 %v698_v13  ;;  %v558_v34 = vcombine.low %v61_v32, %v61_v32  ;;  %v559_v35 = vcombine.high %v61_v32, %v61_v32  ;;  %v560_v36 = vcombine.low %v62_v33, %v62_v33  ;;  %v561_v37 = vcombine.high %v62_v33, %v62_v33  ;;  %v723_v41 = vld [vmem:[#allocation7 + $0x10] sm:$0xff]   ;;  %v724_v42 = vld [vmem:[#allocation7 + $0x18] sm:$0xff]  }
  0x44   :  { %v727_v45 = vld [vmem:[#allocation7 + $0x30] sm:$0xff]   ;;  %v728_v46 = vld [vmem:[#allocation7 + $0x38] sm:$0xff]  }
  0x45   :  { %611 = vmatpush3.bf16.msra.mxu0 %v699_v14  ;;  %372 = vmatprep.mubr.bf16.mxu0 %v559_v35  ;;  %v557_v49 = vld [vmem:[%s927_s2] ss:$0 sm:$0xff]  ;;  %s834_s2 = smov [#allocation8]  }
  0x46   :  { %633 = vmatpush3.bf16.msra.mxu1 %v700_v15  ;;  %612 = vmatprep.subr.bf16.mxu0 %v701_v16  ;;  %v594_v62 = vld [vmem:[%s929_s4] ss:$0 sm:$0xff]  ;;  %s547_s7 = sshll.u32 %s834_s2, 4  ;;  %s548_s7 = int_to_ptr.vmem [resolvable:$true] %s547_s7 }
  0x47   :  { %634 = vmatprep.subr.bf16.mxu1 %v702_v17  ;;  %412 = vmatprep.mubr.bf16.mxu1 %v561_v37  ;;  %s799_s8 = scalar_lea.vmem %s548_s7, 128  ;;  %p804_p11 = scmp.lt.s32.totalorder %s548_s7, %s548_s7 }
  0x48   :  { %p800_p10 = scmp.ne.s32.totalorder %s548_s7, %s799_s8  ;;  %p805_p12 = scmp.lt.s32.totalorder %s799_s8, %s799_s8 }
  0x49   :  { %613 = vmatpush3.bf16.msra.mxu0 %v703_v18 }
  0x4a   :  { %635 = vmatpush3.bf16.msra.mxu1 %v704_v19  ;;  %614 = vmatprep.subr.bf16.mxu0 %v705_v20  ;;  %p806_p13 = por %p805_p12, %p804_p11 }
  0x4b   :  { %636 = vmatprep.subr.bf16.mxu1 %v706_v21 }
  0x4c   :  { %p807_p0 = pnand %p806_p13, %p800_p10 }
  0x4d   :  { %615 = vmatpush3.bf16.msra.mxu0 %v707_v22 }
  0x4e   :  { %637 = vmatpush3.bf16.msra.mxu1 %v708_v23  ;;  %616 = vmatprep.subr.bf16.mxu0 %v709_v24 }
  0x4f   :  { %638 = vmatprep.subr.bf16.mxu1 %v710_v25 }
  0x51   :  { %617 = vmatpush3.bf16.msra.mxu0 %v711_v26 }
  0x52   :  { %639 = vmatpush3.bf16.msra.mxu1 %v712_v27  ;;  %618 = vmatprep.subr.bf16.mxu0 %v713_v28 }
  0x53   :  { %640 = vmatprep.subr.bf16.mxu1 %v714_v29 }
  0x55   :  { %619 = vmatpush3.bf16.msra.mxu0 %v715_v30 }
  0x56   :  { %641 = vmatpush3.bf16.msra.mxu1 %v716_v31  ;;  %657 = vmatprep.subr.bf16.mxu0 %v832_v39 }
  0x58   :  { %373 = vmatmul.mubr.bf16.vlgmr.msra.gmra.mrb[0].mxu0 %v558_v34 }
  0x59   :  { %413 = vmatmul.mubr.bf16.vlgmr.msra.gmra.mrb[0].mxu1 %v560_v36  ;;  %658 = vmatpush3.bf16.msra.mxu0 %v721_v38 }
  0x5a   :  { %659 = vmatprep.subr.bf16.mxu0 %v832_v39  ;;  %673 = vmatprep.mubr.msk.bf16.mxu0 %vm833_vm0, %v832_v39 }
  0x5d   :  { %660 = vmatpush3.bf16.msra.mxu0 %v722_v40 }
  0x5e   :  { %661 = vmatprep.subr.bf16.mxu0 %v832_v39 }
  0x61   :  { %662 = vmatpush3.bf16.msra.mxu0 %v723_v41 }
  0x62   :  { %663 = vmatprep.subr.bf16.mxu0 %v832_v39 }
  0x65   :  { %664 = vmatpush3.bf16.msra.mxu0 %v724_v42 }
  0x66   :  { %665 = vmatprep.subr.bf16.mxu0 %v832_v39 }
  0x69   :  { %666 = vmatpush3.bf16.msra.mxu0 %v725_v43 }
  0x6a   :  { %667 = vmatprep.subr.bf16.mxu0 %v832_v39 }
  0x6d   :  { %668 = vmatpush3.bf16.msra.mxu0 %v726_v44 }
  0x6e   :  { %669 = vmatprep.subr.bf16.mxu0 %v832_v39 }
  0x71   :  { %670 = vmatpush3.bf16.msra.mxu0 %v727_v45 }
  0x72   :  { %671 = vmatprep.subr.bf16.mxu0 %v832_v39 }
  0x75   :  { %672 = vmatpush3.bf16.msra.mxu0 %v728_v46 }
 0x12b   :  { %v620_v47 = vpop.f32.mrb[0].mxu0 }
 0x12c   :  { %v642_v48 = vpop.f32.mrb[0].mxu1  ;;  %v621_v50 = vpop.f32.mrb[1].mxu0 }
 0x12d   :  { %v643_v51 = vpop.f32.mrb[1].mxu1  ;;  %v622_v52 = vadd.f32 %v621_v50, %v620_v47  ;;  %v623_v54 = vpop.f32.mrb[2].mxu0 }
 0x12e   :  { %v644_v53 = vadd.f32 %v643_v51, %v642_v48  ;;  %v645_v55 = vpop.f32.mrb[2].mxu1  ;;  %v624_v56 = vpop.f32.mrb[3].mxu0 }
 0x12f   :  { %v646_v57 = vpop.f32.mrb[3].mxu1  ;;  %v375_v58 = vadd.f32 %v622_v52, %v557_v49 }
 0x131   :  { %v415_v59 = vadd.f32 %v644_v53, %v375_v58 }
 0x133   :  { %v420_v60 = vmax.f32 %v415_v59, 0.0 }
 0x135   :  { %v421_v61 = vpack.c.bf16 %v420_v60, %v420_v60 }
 0x137   :  { %674 = vmatmul.mubr.bf16.vlgmr.msra.gmra.mrb[4].mxu0 %v421_v61 }
 0x20a   :  { %v527_v63 = vpop.f32.mrb[4].mxu0 }
 0x20b   :  { %v528_v0 = vadd.f32 %v594_v62, %v527_v63  ;;  %v675_v1 = vpop.f32.mrb[5].mxu0 }
 0x20c   :  { %v530_v2 = vpop.f32.mrb[6].mxu0 }
 0x20d   :  { %v603_v3 = vmul.f32 -1.442695, %v528_v0  ;;  %v676_v4 = vpop.f32.mrb[7].mxu0 }
 0x20f   :  { %729 = vpow2.f32 %v603_v3 }
 0x219   :  { %v730_v5 = vpop.eup %729 }
 0x21a   :  { %v536_v6 = vadd.f32 1.0, %v730_v5 }
 0x21c   :  { %731 = vrcp.f32 %v536_v6 }
 0x226   :  { %v732_v7 = vpop.eup %731 }
 0x227   :  { %540 = vst.msk [vmem:[#allocation8] sm:$0xff] %vm539_vm1, %v732_v7 }
 0x228   :  { %810 = shalt.err (!%p807_p0)
}
 0x229   :  { %s811_s10 = scalar_lea.hbm %s930_s5, 128 }
 0x22a   :  { %p812_p1 = scmp.ne.s32.totalorder %s930_s5, %s811_s10  ;;  %p815_p2 = scmp.lt.u32.totalorder %s811_s10, %s930_s5 }
 0x22c   :  { %p817_p3 = pnand %p815_p2, %p812_p1 }
 0x22e   :  { %820 = shalt.err (!%p817_p3)
}
 0x22f   :  { %550 = dma.vmem_to_hbm [thread:$0]  %s548_s7, 128, %s930_s5, [#allocation4]  }
 0x230   :  { %825 = dma.done.wait [#allocation4], 128  }
 0x231   :  { %826 = vsyncadd [#allocation4], 4294967168 }
 0x232   :  { %554 = vsyncpa [#allocation3], 1 }
 0x233   :  { %555 = vsyncpa [#allocation6], 1 }
 0x234   :  { %556 = vsyncpa [#allocation4], 1 }

</bundles_post_ra>
